<compile_context>
chip_gen: v6e
topology: v6e:2x2x1
jax: 0.10.0
libtpu: 0.0.40
codegen_flags: <defaults>
</compile_context>

<pallas_src>
import functools

import jax
import jax.numpy as jnp
from jax.experimental import pallas as pl
from jax.experimental.pallas import tpu as pltpu


def _round_up(x, m):
    return ((x + m - 1) // m) * m


# ---------------------------------------------------------------------------
# Kernel body
# ---------------------------------------------------------------------------
def _wavenet_gate_kernel(cx_ref, halo_ref, xr_ref,
                         wab_ref, bfg_ref, wr_ref, br_ref,
                         out_ref, *, dilate, c_out_p, t_tile):
    cx = cx_ref[0]        # (C_in_p, T_TILE)  conv_x tile starting at t0 (stream dtype)
    halo = halo_ref[0]    # (C_in_p, HALO)    head of the next tile (for the t+dilate tap)
    xr = xr_ref[0]        # (C_in_p, T_TILE)  residual input x tile

    # Second conv tap: conv_x[t0 + dilate : t0 + dilate + T_TILE] (static stitch).
    win = jnp.concatenate([cx, halo], axis=-1)      # (C_in_p, T_TILE + HALO)
    tap_b = win[:, dilate:dilate + t_tile]          # static slice

    # Single fused MXU push: [filter ; gate] x [tap_a ; tap_b]
    #   wab: (2*C_out_p, 2*C_in_p)   act: (2*C_in_p, T_TILE)  ->  y: (2*C_out_p, T_TILE)
    act = jnp.concatenate([cx, tap_b], axis=0)
    y = jnp.dot(wab_ref[...], act, preferred_element_type=jnp.float32) + bfg_ref[...]
    filt = y[:c_out_p, :]        # sublane-aligned split (C_out_p % 8 == 0)
    gate = y[c_out_p:, :]

    res = jnp.dot(wr_ref[...], xr, preferred_element_type=jnp.float32) + br_ref[...]

    # Exact reference semantics: tanh(filter_conv) * RAW gate_conv + residual.
    out_ref[0] = jnp.tanh(filt) * gate + res


# ---------------------------------------------------------------------------
# VMEM budgeting / tile selection
# ---------------------------------------------------------------------------
def _vmem_budget_bytes():
    """Per-generation VMEM sizing.  Hard limit = min(75% of physical, 64 MiB),
    tiling budget = 75% of the limit.  v5e/v6e (128 MiB): 64/48 MiB;
    v7x (64 MiB per TC): 48/36 MiB; unknown backend: conservative fallback."""
    try:
        cap = int(pltpu.get_tpu_info().vmem_capacity_bytes)
    except Exception:
        cap = 64 << 20
    limit = min((cap * 3) // 4, 64 << 20)
    budget = (limit * 3) // 4
    return budget, limit


def _pick_time_tile(c_in_p, c_out_p, dilate, t_out, budget_bytes, act_bytes):
    """Largest lane tile (multiple of the halo width) whose double-buffered
    streams PLUS in-kernel temporaries fit the budget."""
    halo = 128 * pl.cdiv(max(dilate, 1), 128)            # >= dilate, multiple of 128

    # Bytes that do not scale with the time tile (halo slivers, weights, biases),
    # conservatively counted double-buffered.
    const = 2 * (c_in_p * halo * act_bytes                         # halo stream
                 + (2 * c_out_p) * (2 * c_in_p) * act_bytes        # fused conv weight
                 + c_out_p * c_in_p * act_bytes                    # residual weight
                 + 3 * c_out_p * 4)                                # biases (f32)

    # Bytes per time-lane column.
    per_col = (2 * (2 * c_in_p * act_bytes + c_out_p * 4)   # double-buffered cx/x/out streams
               + 4 * c_in_p * act_bytes                     # win + tap_b + stacked-act temps
               + 20 * c_out_p)                              # y / res / epilogue f32 temps

    fit_cols = max(halo, (budget_bytes - const) // per_col)
    max_blocks = max(1, min((1 << 16) // halo, pl.cdiv(t_out, halo)))
    n_blocks = max(1, min(fit_cols // halo, max_blocks))
    return n_blocks * halo, halo


# ---------------------------------------------------------------------------
# Host wrapper
# ---------------------------------------------------------------------------
def wavenet_gate(conv_x, x, params, dilate, *, stream_dtype=jnp.bfloat16):
    """conv_x: (B, C_in, T)   x: (B, C_in, T_out)   ->  (B, C_out, T_out) f32.

    Conv1d(kernel_size=2, dilation=dilate) => T_out = T - dilate.  NCW layout is
    kept end-to-end (channels on sublanes, time on lanes).  Activations/weights
    stream as `stream_dtype` (default bf16) with f32 accumulation and epilogue;
    pass stream_dtype=jnp.float32 for bit-faithful numerics."""
    B, C_in, T = conv_x.shape
    T_out = T - dilate
    assert dilate >= 1 and T_out > 0
    assert x.shape == (B, C_in, T_out)

    wf, bf = params["filter_w"], params["filter_b"]   # (C_out, C_in, 2), (C_out,)
    wg, bg = params["gate_w"], params["gate_b"]
    wr, br = params["res_w"], params["res_b"]         # (C_out, C_in, 1), (C_out,)
    C_out = wf.shape[0]

    # Channel padding: sublane-aligned streams, unmasked f32 output stores.
    C_in_p = _round_up(C_in, 16)
    C_out_p = _round_up(C_out, 8)

    act_bytes = jnp.dtype(stream_dtype).itemsize
    budget, vmem_limit = _vmem_budget_bytes()
    t_tile, halo = _pick_time_tile(C_in_p, C_out_p, dilate, T_out, budget, act_bytes)
    n_t = pl.cdiv(T_out, t_tile)
    t_pad = n_t * t_tile             # padded output length (handles ragged tail)
    t_cx = t_pad + halo              # conv_x padded so every halo block stays in bounds
    halo_step = t_tile // halo       # integer by construction (halo | t_tile)

    def pad_act(a, t_len):           # zero-pad channels + time, cast to stream dtype
        _, c, t = a.shape
        return jnp.pad(a, ((0, 0), (0, C_in_p - c), (0, t_len - t))).astype(stream_dtype)

    cx_p = pad_act(conv_x, t_cx)
    x_p = pad_act(x, t_pad)

    def pad_w(w):                    # (C_out, C_in) -> (C_out_p, C_in_p)
        return jnp.pad(w, ((0, C_out_p - C_out), (0, C_in_p - C_in)))

    def pad_b(b):
        return jnp.pad(b, (0, C_out_p - C_out))

    # Fused conv weight: rows = [filter ; gate], cols = [tap_a | tap_b].
    wab = jnp.concatenate(
        [jnp.concatenate([pad_w(wf[:, :, 0]), pad_w(wf[:, :, 1])], axis=1),
         jnp.concatenate([pad_w(wg[:, :, 0]), pad_w(wg[:, :, 1])], axis=1)],
        axis=0).astype(stream_dtype)                                  # (2*C_out_p, 2*C_in_p)
    bfg = jnp.concatenate([pad_b(bf), pad_b(bg)]).reshape(2 * C_out_p, 1)   # f32
    wr0 = pad_w(wr[:, :, 0]).astype(stream_dtype)                     # (C_out_p, C_in_p)
    br0 = pad_b(br).reshape(C_out_p, 1)                               # f32

    wconst = lambda shp: pl.BlockSpec(shp, lambda i, b: (0, 0))

    grid_spec = pltpu.PrefetchScalarGridSpec(
        num_scalar_prefetch=0,
        grid=(n_t, B),               # time-tiles first: robust megacore sharding on v7x
        in_specs=[
            # conv_x tile at t0 (tap a)
            pl.BlockSpec((1, C_in_p, t_tile), lambda i, b: (b, 0, i)),
            # narrow halo sliver of the SAME array at the start of the next tile
            pl.BlockSpec((1, C_in_p, halo), lambda i, b: (b, 0, (i + 1) * halo_step)),
            # residual input x tile
            pl.BlockSpec((1, C_in_p, t_tile), lambda i, b: (b, 0, i)),
            # VMEM-resident weights / biases
            wconst((2 * C_out_p, 2 * C_in_p)),
            wconst((2 * C_out_p, 1)),
            wconst((C_out_p, C_in_p)),
            wconst((C_out_p, 1)),
        ],
        out_specs=pl.BlockSpec((1, C_out_p, t_tile), lambda i, b: (b, 0, i)),
    )

    flops = 2 * B * t_pad * C_in_p * C_out_p * 5          # fused conv (2x2) + residual
    bytes_accessed = (B * C_in_p * (t_pad + n_t * halo) * act_bytes   # conv_x + halo slivers
                      + B * C_in_p * t_pad * act_bytes                # x
                      + B * C_out_p * t_pad * 4                       # out (f32)
                      + 5 * C_out_p * C_in_p * act_bytes + 3 * C_out_p * 4)
    cost = pl.CostEstimate(flops=flops,
                           transcendentals=B * t_pad * C_out_p,       # tanh
                           bytes_accessed=bytes_accessed)

    kernel = functools.partial(_wavenet_gate_kernel,
                               dilate=dilate, c_out_p=C_out_p, t_tile=t_tile)

    out_pad = pl.pallas_call(
        kernel,
        out_shape=jax.ShapeDtypeStruct((B, C_out_p, t_pad), jnp.float32),
        grid_spec=grid_spec,
        compiler_params=pltpu.CompilerParams(
            dimension_semantics=("parallel", "parallel"),
            vmem_limit_bytes=vmem_limit,
        ),
        cost_estimate=cost,
    )(cx_p, cx_p, x_p, wab, bfg, wr0, br0)

    return out_pad[:, :C_out, :T_out]


# ---------------------------------------------------------------------------
# Pure-JAX reference (optionally with matched bf16 operand rounding)
# ---------------------------------------------------------------------------
def _reference(conv_x, x, params, dilate, compute_dtype=jnp.float32):
    B, C_in, T = conv_x.shape
    T_out = T - dilate
    wf, bf = params["filter_w"], params["filter_b"]
    wg, bg = params["gate_w"], params["gate_b"]
    wr, br = params["res_w"], params["res_b"]
    cxd = conv_x.astype(compute_dtype)
    xd = x.astype(compute_dtype)

    def conv_k2(w, b):
        w = w.astype(compute_dtype)
        a = cxd[:, :, 0:T_out]
        c = cxd[:, :, dilate:dilate + T_out]
        y = (jnp.einsum("bct,oc->bot", a, w[:, :, 0], preferred_element_type=jnp.float32)
             + jnp.einsum("bct,oc->bot", c, w[:, :, 1], preferred_element_type=jnp.float32))
        return y + b[None, :, None]

    filt = conv_k2(wf, bf)
    gate = conv_k2(wg, bg)
    resid = (jnp.einsum("bct,oc->bot", xd, wr[:, :, 0].astype(compute_dtype),
                        preferred_element_type=jnp.float32)
             + br[None, :, None])
    return jnp.tanh(filt) * gate + resid


def init_params(key, input_dim, output_dim):
    ks = jax.random.split(key, 6)
    scale = 0.1
    return {
        "filter_w": scale * jax.random.normal(ks[0], (output_dim, input_dim, 2), jnp.float32),
        "filter_b": scale * jax.random.normal(ks[1], (output_dim,), jnp.float32),
        "gate_w":   scale * jax.random.normal(ks[2], (output_dim, input_dim, 2), jnp.float32),
        "gate_b":   scale * jax.random.normal(ks[3], (output_dim,), jnp.float32),
        "res_w":    scale * jax.random.normal(ks[4], (output_dim, input_dim, 1), jnp.float32),
        "res_b":    scale * jax.random.normal(ks[5], (output_dim,), jnp.float32),
    }


if __name__ == "__main__":
    key = jax.random.PRNGKey(0)
    k_cx, k_x, k_p = jax.random.split(key, 3)

    B, C_in, C_out, T, dilate = 2, 4, 4, 16, 2
    T_out = T - dilate

    conv_x = jax.random.normal(k_cx, (B, C_in, T), jnp.float32)    # NCW
    x = jax.random.normal(k_x, (B, C_in, T_out), jnp.float32)      # NCW
    params = init_params(k_p, C_in, C_out)

    out = wavenet_gate(conv_x, x, params, dilate)
    out = jax.block_until_ready(out)
    assert out.shape == (B, C_out, T_out)

    # Tight check vs. a matched-precision (bf16 operands, f32 accumulation) reference.
    ref_bf16 = _reference(conv_x, x, params, dilate, compute_dtype=jnp.bfloat16)
    assert jnp.allclose(out, ref_bf16, atol=5e-3, rtol=5e-3), \
        float(jnp.max(jnp.abs(out - ref_bf16)))

    # Loose sanity check vs. full-f32 math (bounds the bf16-streaming error).
    ref_f32 = _reference(conv_x, x, params, dilate, compute_dtype=jnp.float32)
    assert jnp.allclose(out, ref_f32, atol=5e-2, rtol=5e-2), \
        float(jnp.max(jnp.abs(out - ref_f32)))

    # TODO(synk): batch_norm=True branch (BatchNorm1d on filter/gate/residual
    # outputs, as used by Model's WaveNetGate instances) not implemented here.
    print("KERNEL_OK")
</pallas_src>

<mosaic_0001>
module attributes {stable_mosaic.version = 11 : i64} {
  func.func @_wavenet_gate_kernel(%arg0: i32, %arg1: i32, %arg2: memref<1x16x128xbf16, #tpu.memory_space<vmem>>, %arg3: memref<1x16x128xbf16, #tpu.memory_space<vmem>>, %arg4: memref<1x16x128xbf16, #tpu.memory_space<vmem>>, %arg5: memref<16x32xbf16, #tpu.memory_space<vmem>>, %arg6: memref<16x1xf32, #tpu.memory_space<vmem>>, %arg7: memref<8x16xbf16, #tpu.memory_space<vmem>>, %arg8: memref<8x1xf32, #tpu.memory_space<vmem>>, %arg9: memref<1x8x128xf32, #tpu.memory_space<vmem>>) attributes {dimension_semantics = [#tpu.dimension_semantics<parallel>, #tpu.dimension_semantics<parallel>], iteration_bounds = array<i64: 1, 2>, scalar_prefetch = 0 : i64, scratch_operands = 0 : i64, tpu.core_type = #tpu.core_type<tc>, window_params = [{transform_indices = @transform_0, window_bounds = array<i64: 1, 16, 128>}, {transform_indices = @transform_1, window_bounds = array<i64: 1, 16, 128>}, {transform_indices = @transform_2, window_bounds = array<i64: 1, 16, 128>}, {pipeline_mode = #tpu.pipeline_mode<synchronous>, transform_indices = @transform_3, window_bounds = array<i64: 16, 32>}, {pipeline_mode = #tpu.pipeline_mode<synchronous>, transform_indices = @transform_4, window_bounds = array<i64: 16, 1>}, {pipeline_mode = #tpu.pipeline_mode<synchronous>, transform_indices = @transform_5, window_bounds = array<i64: 8, 16>}, {pipeline_mode = #tpu.pipeline_mode<synchronous>, transform_indices = @transform_6, window_bounds = array<i64: 8, 1>}, {transform_indices = @transform_7, window_bounds = array<i64: 1, 8, 128>}]} {
    %c0 = arith.constant 0 : index
    %c0_0 = arith.constant 0 : index
    %c0_1 = arith.constant 0 : index
    %0 = vector.load %arg2[%c0, %c0_0, %c0_1] : memref<1x16x128xbf16, #tpu.memory_space<vmem>>, vector<1x16x128xbf16>
    %1 = vector.shape_cast %0 : vector<1x16x128xbf16> to vector<16x128xbf16>
    %c0_2 = arith.constant 0 : index
    %c0_3 = arith.constant 0 : index
    %c0_4 = arith.constant 0 : index
    %2 = vector.load %arg3[%c0_2, %c0_3, %c0_4] : memref<1x16x128xbf16, #tpu.memory_space<vmem>>, vector<1x16x128xbf16>
    %3 = vector.shape_cast %2 : vector<1x16x128xbf16> to vector<16x128xbf16>
    %c0_5 = arith.constant 0 : index
    %c0_6 = arith.constant 0 : index
    %c0_7 = arith.constant 0 : index
    %4 = vector.load %arg4[%c0_5, %c0_6, %c0_7] : memref<1x16x128xbf16, #tpu.memory_space<vmem>>, vector<1x16x128xbf16>
    %5 = vector.shape_cast %4 : vector<1x16x128xbf16> to vector<16x128xbf16>
    %6 = tpu.concatenate %1, %3 in 1 : vector<16x128xbf16>, vector<16x128xbf16> -> vector<16x256xbf16>
    %7 = vector.extract_strided_slice %6 {offsets = [0, 2], sizes = [16, 128], strides = [1, 1]} : vector<16x256xbf16> to vector<16x128xbf16>
    %8 = tpu.concatenate %1, %7 in 0 : vector<16x128xbf16>, vector<16x128xbf16> -> vector<32x128xbf16>
    %c0_8 = arith.constant 0 : index
    %c0_9 = arith.constant 0 : index
    %9 = vector.load %arg5[%c0_8, %c0_9] : memref<16x32xbf16, #tpu.memory_space<vmem>>, vector<16x32xbf16>
    %cst = arith.constant dense<0.000000e+00> : vector<16x128xf32>
    %10 = tpu.matmul %9, %8, %cst {dimension_numbers = #tpu.dot_dimension_numbers<[1], [0], [0], [1], [0, 0, 1, 1], [], []>} : vector<16x32xbf16>, vector<32x128xbf16>, vector<16x128xf32> -> vector<16x128xf32>
    %c0_10 = arith.constant 0 : index
    %c0_11 = arith.constant 0 : index
    %11 = vector.load %arg6[%c0_10, %c0_11] : memref<16x1xf32, #tpu.memory_space<vmem>>, vector<16x1xf32>
    %12 = vector.broadcast %11 : vector<16x1xf32> to vector<16x128xf32>
    %13 = arith.addf %10, %12 : vector<16x128xf32>
    %14 = vector.extract_strided_slice %13 {offsets = [0, 0], sizes = [8, 128], strides = [1, 1]} : vector<16x128xf32> to vector<8x128xf32>
    %15 = vector.extract_strided_slice %13 {offsets = [8, 0], sizes = [8, 128], strides = [1, 1]} : vector<16x128xf32> to vector<8x128xf32>
    %c0_12 = arith.constant 0 : index
    %c0_13 = arith.constant 0 : index
    %16 = vector.load %arg7[%c0_12, %c0_13] : memref<8x16xbf16, #tpu.memory_space<vmem>>, vector<8x16xbf16>
    %cst_14 = arith.constant dense<0.000000e+00> : vector<8x128xf32>
    %17 = tpu.matmul %16, %5, %cst_14 {dimension_numbers = #tpu.dot_dimension_numbers<[1], [0], [0], [1], [0, 0, 1, 1], [], []>} : vector<8x16xbf16>, vector<16x128xbf16>, vector<8x128xf32> -> vector<8x128xf32>
    %c0_15 = arith.constant 0 : index
    %c0_16 = arith.constant 0 : index
    %18 = vector.load %arg8[%c0_15, %c0_16] : memref<8x1xf32, #tpu.memory_space<vmem>>, vector<8x1xf32>
    %19 = vector.broadcast %18 : vector<8x1xf32> to vector<8x128xf32>
    %20 = arith.addf %17, %19 : vector<8x128xf32>
    %21 = math.tanh %14 : vector<8x128xf32>
    %22 = arith.mulf %21, %15 : vector<8x128xf32>
    %23 = arith.addf %22, %20 : vector<8x128xf32>
    %c0_17 = arith.constant 0 : index
    %c0_18 = arith.constant 0 : index
    %c0_19 = arith.constant 0 : index
    %24 = vector.load %arg9[%c0_17, %c0_18, %c0_19] : memref<1x8x128xf32, #tpu.memory_space<vmem>>, vector<1x8x128xf32>
    %25 = vector.shape_cast %24 : vector<1x8x128xf32> to vector<8x128xf32>
    %26 = vector.shape_cast %23 : vector<8x128xf32> to vector<1x8x128xf32>
    tpu.vector_store %arg9[%c0_17, %c0_18, %c0_19], %26 {strides = array<i32>} : memref<1x8x128xf32, #tpu.memory_space<vmem>>, vector<1x8x128xf32>,
    return
  }
  func.func @transform_0(%arg0: i32, %arg1: i32) -> (i32, i32, i32) {
    %c0_i32 = arith.constant 0 : i32
    %c0_i32_0 = arith.constant 0 : i32
    return %arg1, %c0_i32, %arg0 : i32, i32, i32
  }
  func.func @transform_1(%arg0: i32, %arg1: i32) -> (i32, i32, i32) {
    %c1_i32 = arith.constant 1 : i32
    %0 = arith.addi %arg0, %c1_i32 : i32
    %c1_i32_0 = arith.constant 1 : i32
    %1 = arith.muli %0, %c1_i32_0 : i32
    %c0_i32 = arith.constant 0 : i32
    %c0_i32_1 = arith.constant 0 : i32
    return %arg1, %c0_i32, %1 : i32, i32, i32
  }
  func.func @transform_2(%arg0: i32, %arg1: i32) -> (i32, i32, i32) {
    %c0_i32 = arith.constant 0 : i32
    %c0_i32_0 = arith.constant 0 : i32
    return %arg1, %c0_i32, %arg0 : i32, i32, i32
  }
  func.func @transform_3(%arg0: i32, %arg1: i32) -> (i32, i32) {
    %c0_i32 = arith.constant 0 : i32
    %c0_i32_0 = arith.constant 0 : i32
    %c0_i32_1 = arith.constant 0 : i32
    return %c0_i32, %c0_i32_0 : i32, i32
  }
  func.func @transform_4(%arg0: i32, %arg1: i32) -> (i32, i32) {
    %c0_i32 = arith.constant 0 : i32
    %c0_i32_0 = arith.constant 0 : i32
    %c0_i32_1 = arith.constant 0 : i32
    return %c0_i32, %c0_i32_0 : i32, i32
  }
  func.func @transform_5(%arg0: i32, %arg1: i32) -> (i32, i32) {
    %c0_i32 = arith.constant 0 : i32
    %c0_i32_0 = arith.constant 0 : i32
    %c0_i32_1 = arith.constant 0 : i32
    return %c0_i32, %c0_i32_0 : i32, i32
  }
  func.func @transform_6(%arg0: i32, %arg1: i32) -> (i32, i32) {
    %c0_i32 = arith.constant 0 : i32
    %c0_i32_0 = arith.constant 0 : i32
    %c0_i32_1 = arith.constant 0 : i32
    return %c0_i32, %c0_i32_0 : i32, i32
  }
  func.func @transform_7(%arg0: i32, %arg1: i32) -> (i32, i32, i32) {
    %c0_i32 = arith.constant 0 : i32
    %c0_i32_0 = arith.constant 0 : i32
    return %arg1, %c0_i32, %arg0 : i32, i32, i32
  }
}

</mosaic_0001>

<bundles_post_ra>
// kernel: tpu_custom_call.1
= control target key start
LH: loop header
LB: loop body
LE: loop exit
PB: predicated region body
PF: predicated region fallthrough
CT: control target
= control target key end

     0   :  { %s1199_s0 = inlined_call_operand.hbm [shape: bf16[2,16,256], index: 0, kind: input, shape index: {}]   ;;  %s1200_s1 = inlined_call_operand.hbm [shape: bf16[2,16,256], index: 1, kind: input, shape index: {}]   ;;  %s1201_s2 = inlined_call_operand.vmem [shape: bf16[2,16,128], index: 2, kind: input, shape index: {}]   ;;  %s1202_s3 = inlined_call_operand.vmem [shape: bf16[16,32], index: 3, kind: input, shape index: {}]   ;;  %s1203_s4 = inlined_call_operand.vmem [shape: f32[16,1], index: 4, kind: input, shape index: {}]   ;;  %s1204_s5 = inlined_call_operand.vmem [shape: bf16[8,16], index: 5, kind: input, shape index: {}]   ;;  %s1205_s6 = inlined_call_operand.vmem [shape: f32[8,1], index: 6, kind: input, shape index: {}]   ;;  %s1206_s7 = inlined_call_operand.hbm [shape: f32[2,8,128], index: 7, kind: output, shape index: {}]  }
   0x1   :  { %1214 = sst [smem:[#allocation16_spill]] %s1199_s0 }
   0x2   :  { %1215 = sst [smem:[#allocation17_spill]] %s1206_s7 }
   0x3   :  { %12 = vsyncpa [#allocation3], 0 }
   0x4   :  { %14 = vsyncpa [#allocation3 + $0x1], 0 }
   0x5   :  { %15 = vsyncpa [#allocation6], 0 }
   0x6   :  { %17 = vsyncpa [#allocation6 + $0x1], 0 }
   0x7   :  { %18 = vsyncpa [#allocation4], 0 }
   0x8   :  { %20 = vsyncpa [#allocation4 + $0x1], 0  ;;  %s1005_s24 = smov 0   ;;  %s1007_s25 = smov 0  }
   0x9   :  { %s1009_s26 = smov 0   ;;  %s1011_s27 = smov 0  }
   0xa   :  { %s1013_s28 = smov 0   ;;  %s1015_s29 = smov 0  }
   0xb LB: > { %1216 = sst [smem:[#allocation11_spill]] %s933_s24  ;;  %s682_s30 = sadd.s32 4294967295, %s953_s29   ;;  %s953_s29 = sphi %s1015_s29, %s26_s29   ;;  %s949_s28 = sphi %s1013_s28, %s1240_s28   ;;  %s945_s27 = sphi %s1011_s27, %s1239_s27   ;;  %s941_s26 = sphi %s1009_s26, %s1235_s26   ;;  %s937_s25 = sphi %s1007_s25, %s1238_s25   ;;  %s933_s24 = sphi %s1005_s24, %s1237_s24  }
   0xc   : > { %1217 = sst [smem:[#allocation12_spill]] %s941_s26  ;;  %s683_s8 = sadd.s32 4294967294, %s953_s29  }
   0xd   : > { %s35_s9 = sadd.s32 1, %s949_s28  ;;  %s47_s10 = sadd.s32 1, %s941_s26 }
   0xe   : > { %p36_p0 = scmp.ge.s32.totalorder %s35_s9, 2  ;;  %p54_p1 = scmp.ne.s32.totalorder %s941_s26, %s937_s25 }
   0xf   : > { %p55_p2 = scmp.eq.s32.totalorder %s953_s29, 0  ;;  %p60_p3 = scmp.ne.s32.totalorder %s937_s25, %s933_s24 }
  0x10   : > { %s1242_s9 = smov (%p36_p0, %s35_s9), 0  ;;  %p61_p5 = scmp.eq.s32.totalorder %s682_s30, 0 }
  0x11   : > { %1218 = sst [smem:[#allocation13_spill]] %s1242_s9  ;;  %p1046_p4 = por %p55_p2, %p54_p1 }
  0x12   : > { %s42_s12 = ssub.s32 %s949_s28, %s1242_s9  ;;  %p228_p6 = scmp.eq.s32.totalorder %s682_s30, 1 }
  0x13   : > { %p45_p7 = scmp.eq.s32.totalorder %s42_s12, 0  ;;  %p1052_p8 = por %p61_p5, %p60_p3 }
  0x14   : > { %p1056_p9 = por %p228_p6, %p54_p1  ;;  %p234_p10 = scmp.eq.s32.totalorder %s683_s8, 1 }
  0x15   : > { %s1061_s15 = scalar_select %p45_p7, %s941_s26, %s47_s10  }
  0x16   : > { %p1063_p11 = por %p234_p10, %p60_p3  ;;  %p747_p13 = scmp.lt.s32.totalorder %s953_s29, 2 }
  0x17   : > { %1222 = sst [smem:[#allocation14_spill]] %s1061_s15  ;;  %s1070_s17 = sand.u32 1, %s941_s26  }
  0x18   : > { %s1223_s16 = scalar_select %p1063_p11, 1, 0 }
  0x19   : > { %s1207_s18 = sshll.u32 %s1070_s17, 3  ;;  %s1208_s19 = sshll.u32 %s949_s28, 8 }
  0x1a   : > { %1224 = sst [smem:[#allocation15_spill]] %s1223_s16  ;;  %s270_s23 = scalar_lea.vmem [#allocation2], %s1207_s18 }
  0x1b   : > { %s1225_s0 = sld [smem:[#allocation16_spill]]  ;;  %s278_s30 = sshll.u32 %s270_s23, 4  ;;  %s279_s30 = int_to_ptr.vmem [resolvable:$true] %s278_s30 }
  0x1c   : > { %p1083_p0 = pnand %p747_p13, %p1046_p4  ;;  %s267_s10 = scalar_lea.sflag [#allocation3], %s1070_s17 }
  0x1d   : > { %s825_s12 = scalar_lea.vmem %s279_s30, 128  ;;  %s955_s20 = smov [#allocation2]  }
  0x1e   : > { %p814_p1 = pneg %p1083_p0  ;;  %p826_p2 = scmp.ne.s32.totalorder %s279_s30, %s825_s12 }
  0x1f   : > { %s830_s21 = sshll.u32 %s955_s20, 4  ;;  %s831_s21 = int_to_ptr.vmem [resolvable:$false] %s830_s21 }
  0x20   : > { %p828_p3 = pnand %p826_p2, %p814_p1  ;;  %s832_s23 = scalar_lea.vmem %s831_s21, 256 }
  0x21   : > { %s277_s22 = scalar_lea.hbm %s1225_s0, %s1208_s19  ;;  %p833_p6 = scmp.lt.s32.totalorder %s279_s30, %s831_s21 }
  0x22   : > { %p829_p5 = pneg %p828_p3  ;;  %p834_p4 = scmp.lt.s32.totalorder %s832_s23, %s825_s12 }
  0x24   : > { %p835_p7 = por %p834_p4, %p833_p6 }
  0x26   : > { %p836_p10 = pnand %p835_p7, %p829_p5 }
  0x28   : > { %839 = shalt.err (!%p836_p10)
}
  0x29   : > { %s956_s11 = smov 128   ;;  %s957_s18 = smov 64  }
  0x2a   : > { %s958_s19 = smov 4   ;;  %p692_p13 = scmp.ge.s32.totalorder %s953_s29, 1 }
  0x2b   : > { %739 = dma.hbm_to_vmem [thread:$0]  (!%p1083_p0), %s277_s22, 128, %s279_s30, %s267_s10, %s956_s11, %s957_s18, %s958_s19  }
  0x2c   : > { %p320_p2 = scmp.lt.s32.totalorder %s953_s29, 3  ;;  %s1228_s20 = sshll.u32 %s949_s28, 8 }
  0x2d   : > { %s597_s0 = scalar_lea.hbm %s1200_s1, %s1228_s20  ;;  %s1229_s15 = sshll.u32 %s1070_s17, 3 }
  0x2e   : > { %p1099_p3 = pnand %p692_p13, %p320_p2  ;;  %s598_s9 = scalar_lea.hbm %s597_s0, 64 }
  0x2f   : > { %s292_s26 = scalar_lea.vmem [#allocation5], %s1229_s15  ;;  %s289_s24 = scalar_lea.sflag [#allocation6], %s1070_s17 }
  0x30   : > { %s301_s16 = sshll.u32 %s292_s26, 4  ;;  %s959_s22 = smov [#allocation5]   ;;  %s302_s16 = int_to_ptr.vmem [resolvable:$true] %s301_s16 }
  0x31   : > { %s853_s7 = scalar_lea.vmem %s302_s16, 128  ;;  %s858_s30 = sshll.u32 %s959_s22, 4  ;;  %s859_s30 = int_to_ptr.vmem [resolvable:$false] %s858_s30 }
  0x32   : > { %p854_p5 = scmp.ne.s32.totalorder %s302_s16, %s853_s7  ;;  %s860_s10 = scalar_lea.vmem %s859_s30, 256 }
  0x33   : > { %p861_p7 = scmp.lt.s32.totalorder %s302_s16, %s859_s30  ;;  %p862_p10 = scmp.lt.s32.totalorder %s860_s10, %s853_s7 }
  0x34   : > { %p856_p6 = pnand %p854_p5, %p814_p1 }
  0x35   : > { %p863_p13 = por %p862_p10, %p861_p7 }
  0x36   : > { %p857_p4 = pneg %p856_p6 }
  0x38   : > { %p864_p2 = pnand %p863_p13, %p857_p4 }
  0x3a   : > { %867 = shalt.err (!%p864_p2)
}
  0x3b   : > { %742 = dma.hbm_to_vmem [thread:$0]  (!%p1083_p0), %s598_s9, 128, %s302_s16, %s289_s24, %s956_s11, %s957_s18, %s958_s19  }
  0x3c   : > { %324 = sbr.rel (%p1099_p3) target bundleno = 424 (0x1a8), region = 48  ;;  %s1121_s0 = sand.u32 (!%p1099_p3), 1, %s937_s25  }
  0x3d   : > { %s1124_s26 = sshll.u32 (!%p1099_p3), %s1121_s0, 3  ;;  %s327_s7 = scalar_lea.sflag (!%p1099_p3), [#allocation3], %s1121_s0 }
  0x3e   : > { %s330_s15 = scalar_lea.vmem (!%p1099_p3), [#allocation2], %s1124_s26 }
  0x41   : > { %920 = dma.done.wait (%p1052_p8), %s327_s7, 128  }
  0x42   : > { %922 = vsyncadd (%p1052_p8), %s327_s7, 4294967168  ;;  %s336_s24 = scalar_lea.sflag [#allocation6], %s1121_s0  ;;  %s339_s9 = scalar_lea.vmem [#allocation5], %s1124_s26 }
  0x43   : > { %924 = dma.done.wait (%p1052_p8), %s336_s24, 128  }
  0x44   : > { %926 = vsyncadd (%p1052_p8), %s336_s24, 4294967168  ;;  %v960_v0 = vmov 0.0   ;;  %vm961_vm0 = vmmov 0   ;;  %v806_v1 = vld [vmem:[%s330_s15] sm:$0xff]   ;;  %p384_p0 = scmp.lt.s32.totalorder %s945_s27, 1  ;;  %s962_s16 = smov 126  }
  0x45   : > { %716 = vmatprep.subr.bf16.mxu0 %v960_v0  ;;  %724 = vmatprep.subr.bf16.mxu1 %v960_v0  ;;  %v807_v2 = vld [vmem:[%s339_s9] sm:$0xff]   ;;  %v419_v3 = vld [vmem:[%s1203_s4] sm:$0xff]  ;;  %v963_v4 = vmov 0   ;;  %v420_v5 = vld [vmem:[%s1203_s4 + $0x8] sm:$0xff]  ;;  %vm494_vm1 = vcmask 130048   ;;  %vm414_vm2 = vcmask 1031168  }
  0x46   : > { %720 = vmatprep.mubr.msk.bf16.mxu0 %vm961_vm0, %v960_v0  ;;  %726 = vmatprep.mubr.msk.bf16.mxu1 %vm961_vm0, %v960_v0  ;;  %s385_s17 = scalar_select %p384_p0, %s945_s27, 1  ;;  %v482_v7 = vld [vmem:[%s1205_s6] sm:$0xff]  ;;  %vm436_vm3 = vcmask 261120  }
  0x47   : > { %410 = vrot.lane.b32.xlu0 %v806_v1, %s962_s16  ;;  %804 = vset.pattern.permute.xlu1 %v963_v4  ;;  %v481_v8 = vld [vmem:[%s1204_s5] sm:$0xf]  ;;  %s705_s24 = sshll.u32 %s945_s27, 7  ;;  %s382_s9 = scalar_lea.vmem [#allocation7], %s1124_s26 }
  0x48   : > { %s710_s13 = sshll.u32 %s385_s17, 3  ;;  %805 = vset.pattern.permute.xlu0 %v963_v4  ;;  %423 = vperm.xlu1 %804, %v419_v3   ;;  %v808_v12 = vld [vmem:[%s1202_s3] sm:$0xff]   ;;  %s1230_s19 = sld [smem:[#allocation17_spill]] }
  0x49   : > { %s391_s12 = scalar_lea.vmem %s1201_s2, %s710_s13  ;;  %s543_s8 = scalar_lea.sflag [#allocation4], %s1121_s0 }
  0x4a   : > { %v809_v6 = vld [vmem:[%s391_s12] sm:$0xff]   ;;  %s964_s12 = smov [#allocation7]  }
  0x4b   : > { %412 = vrot.lane.b32.xlu0 %v807_v2, %s962_s16  ;;  %725 = vmatpush3.bf16.msra.mxu1 %v809_v6  ;;  %s557_s16 = sshll.u32 %s382_s9, 4  ;;  %s873_s20 = sshll.u32 %s964_s12, 4  ;;  %s558_s16 = int_to_ptr.vmem [resolvable:$true] %s557_s16  ;;  %s874_s20 = int_to_ptr.vmem [resolvable:$false] %s873_s20 }
  0x4c   : > { %428 = vperm.xlu1 %804, %v420_v5   ;;  %s869_s11 = scalar_lea.vmem %s558_s16, 128  ;;  %s875_s27 = scalar_lea.vmem %s874_s20, 256 }
  0x4d   : > { %p870_p8 = scmp.ne.s32.totalorder %s558_s16, %s869_s11  ;;  %p876_p5 = scmp.lt.s32.totalorder %s558_s16, %s874_s20 }
  0x4e   : > { %727 = vmatmul.mubr.msk.bf16.vlgmr.msra.gmra.mxu1 %vm494_vm1, %v481_v8  ;;  %s555_s13 = scalar_lea.hbm %s1230_s19, %s705_s24  ;;  %p877_p6 = scmp.lt.s32.totalorder %s875_s27, %s869_s11 }
  0x4f   : > { %485 = vperm.xlu0 %805, %v482_v7   ;;  %p871_p1 = pnand %p870_p8, %p1056_p9 }
  0x50   : > { %p878_p4 = por %p877_p6, %p876_p5 }
  0x51   : > { %p872_p3 = pneg %p871_p1 }
  0x53   : > { %p879_p7 = pnand %p878_p4, %p872_p3 }
  0xb9   : > { %v411_v9 = vpop.permute.xlu0 %410 }
  0xbd   : > { %v413_v10 = vpop.permute.xlu0 %412 }
  0xbe   : > { %v415_v11 = vsel %vm414_vm2, %v411_v9, %v413_v10 }
  0xbf   : > { %717 = vmatpush3.bf16.msra.mxu0 %v415_v11 }
  0xc0   : > { %718 = vmatprep.subr.bf16.mxu0 %v960_v0 }
  0xc3   : > { %719 = vmatpush3.bf16.msra.mxu0 %v806_v1  ;;  %v424_v17 = vpop.permute.xlu1 %423 }
  0xc6   : > { %721 = vmatmul.mubr.msk.bf16.vlgmr.msra.gmra.mxu0 %vm436_vm3, %v808_v12 }
  0xc7   : > { %v429_v24 = vpop.permute.xlu1 %428 }
  0xca   : > { %v486_v23 = vpop.permute.xlu0 %485 }
 0x10e   : > { %v532_v13 = vpop.f32.mrf.mxu1 }
 0x10f   : > { %v533_v26 = vadd.f32 %v532_v13, %v486_v23 }
 0x110   : > { %v728_v14 = vpop.f32.mrf.mxu1 }
 0x112   : > { %v535_v15 = vpop.f32.mrf.mxu1 }
 0x114   : > { %v729_v16 = vpop.f32.mrf.mxu1 }
 0x186   : > { %v474_v18 = vpop.f32.mrf.mxu0 }
 0x187   : > { %v475_v19 = vadd.f32 %v474_v18, %v424_v17 }
 0x188   : > { %v722_v20 = vpop.f32.mrf.mxu0 }
 0x189   : > { %810 = vtanh.f32 %v475_v19 }
 0x18a   : > { %v477_v21 = vpop.f32.mrf.mxu0 }
 0x18b   : > { %v478_v25 = vadd.f32 %v477_v21, %v429_v24 }
 0x18c   : > { %v723_v22 = vpop.f32.mrf.mxu0 }
 0x196   : > { %v811_v27 = vpop.eup %810 }
 0x197   : > { %v539_v28 = vmul.f32 %v811_v27, %v478_v25 }
 0x199   : > { %v540_v29 = vadd.f32 %v539_v28, %v533_v26 }
 0x19b   : > { %541 = vst [vmem:[%s382_s9] sm:$0xff] %v540_v29 }
 0x19c   : > { %882 = shalt.err (!%p879_p7)
}
 0x19d   : > { %s883_s26 = scalar_lea.hbm %s555_s13, 128  ;;  %s887_s23 = scalar_lea.hbm %s1230_s19, 256 }
 0x19e   : > { %p884_p10 = scmp.ne.s32.totalorder %s555_s13, %s883_s26  ;;  %p888_p0 = scmp.lt.s32.totalorder %s555_s13, %s1230_s19 }
 0x19f   : > { %p889_p8 = scmp.lt.s32.totalorder %s887_s23, %s883_s26 }
 0x1a0   : > { %p885_p13 = pnand %p884_p10, %p1056_p9 }
 0x1a1   : > { %p890_p1 = por %p889_p8, %p888_p0 }
 0x1a2   : > { %p886_p2 = pneg %p885_p13 }
 0x1a4   : > { %p891_p12 = pnand %p890_p1, %p886_p2 }
 0x1a6   : > { %894 = shalt.err (!%p891_p12)
}
 0x1a7   : > { %734 = dma.vmem_to_hbm [thread:$0]  (%p1056_p9), %s558_s16, 128, %s555_s13, %s543_s8  }
 0x1a8 PF: > { %s1231_s10 = sld [smem:[#allocation11_spill]]  ;;  %p1233_p3 = scmp.ge.s32.totalorder %s953_s29, 2 }
 0x1aa   : > { %p744_p5 = pnand %p1233_p3, %p1063_p11 }
 0x1ac   : > { %p745_p6 = pneg %p744_p5 }
 0x1ae   : > { %s569_s15 = sand.u32 1, %s1231_s10  }
 0x1af   : > { %s570_s24 = scalar_lea.sflag [#allocation4], %s569_s15 }
 0x1b0   : > { %928 = dma.done.wait (%p745_p6), %s570_s24, 128  }
 0x1b1   : > { %930 = vsyncadd (%p745_p6), %s570_s24, 4294967168  ;;  %s26_s29 = sadd.s32 1, %s953_s29   ;;  %s1234_s9 = sld [smem:[#allocation12_spill]] }
 0x1b2   : > { %p23_p4 = scmp.ge.s32.totalorder %s26_s29, 4   ;;  %s1235_s26 = sld [smem:[#allocation14_spill]] }
 0x1b3   : > { %s1236_s14 = sld [smem:[#allocation13_spill]]  ;;  %s1237_s24 = smov %s937_s25 }
 0x1b4   : > { %s1239_s27 = smov %s949_s28 }
 0x1b5   :  { %25 = sbr.rel (!%p23_p4) target bundleno = 11 (0xb), region = 109 }
 0x1b7   : > { %s1238_s25 = smov %s1234_s9 }
 0x1b9   : > { %s1240_s28 = smov %s1236_s14 }
 0x1ba   :  { %575 = vsyncpa [#allocation3], 1 }
 0x1bb   :  { %577 = vsyncpa [#allocation3 + $0x1], 1 }
 0x1bc   :  { %578 = vsyncpa [#allocation6], 1 }
 0x1bd   :  { %580 = vsyncpa [#allocation6 + $0x1], 1 }
 0x1be   :  { %581 = vsyncpa [#allocation4], 1 }
 0x1bf   :  { %583 = vsyncpa [#allocation4 + $0x1], 1 }

</bundles_post_ra>
